<compile_context>
chip_gen: v6e
topology: v6e:2x2x1
jax: 0.10.0
libtpu: 0.0.40
codegen_flags: <defaults>
</compile_context>

<pallas_src>
import jax
import jax.numpy as jnp
from jax.experimental import pallas as pl
from jax.experimental.pallas import tpu as pltpu

_LANE = 128
_SUBLANE = 8


def _round_up(x, m):
    return ((x + m - 1) // m) * m


def _pos_embedding_kernel(idx_ref, emb_ref, out_ref):
    """idx_ref: VMEM (TM, 1) int32   -- position // group_size for this row tile
    emb_ref:  VMEM (num_pos, TV) f32 -- embedding table slab (lane-tiled V)
    out_ref:  VMEM (TM, TV) f32      -- gathered embeddings (one dense store)
    """
    tm = out_ref.shape[0]
    num_pos = emb_ref.shape[0]
    idx = idx_ref[...]                                              # (TM, 1)
    pos_iota = jax.lax.broadcasted_iota(jnp.int32, (tm, num_pos), 1)
    one_hot = (idx == pos_iota).astype(emb_ref.dtype)               # (TM, num_pos)
    # One-hot gather on the MXU. HIGHEST precision keeps the gather bit-exact
    # (default f32 matmul may lower to truncated bf16 passes).
    out_ref[...] = jnp.dot(
        one_hot,
        emb_ref[...],
        preferred_element_type=jnp.float32,
        precision=jax.lax.Precision.HIGHEST,
    ).astype(out_ref.dtype)


def _vmem_cap_bytes():
    """~75% of physical VMEM; conservative 64 MiB assumption if query fails."""
    phys = 64 * 1024 * 1024
    try:
        info = pltpu.get_tpu_info()
        phys = int(getattr(info, "vmem_capacity_bytes", phys))
    except Exception:
        pass
    return (phys * 3) // 4


def _vmem_bytes(tm, tv, num_pos):
    emb = 2 * num_pos * tv * 4          # table slab, double-buffered
    out = 2 * tm * tv * 4               # output tile, double-buffered
    idx = 2 * tm * _LANE * 4            # (TM, 1) int32 idx tile pads lanes to 128
    tmp = 2 * tm * num_pos * 4          # one-hot LHS + iota/compare temporaries
    return emb + out + idx + tmp + (2 << 20)


def pos_model_forward(positions, tokens, emb_weight, position_group_size,
                      tm=None, tv=None):
    """Pallas implementation of PosModel.forward(positions, tokens)."""
    del tokens  # unused, matches the PyTorch forward
    B, S = positions.shape
    num_pos, V = emb_weight.shape

    # Glue in plain JAX: integer division by the group size + flatten + clamp.
    idx = (positions // position_group_size).astype(jnp.int32).reshape(-1)
    idx = jnp.clip(idx, 0, num_pos - 1)
    N = idx.shape[0]

    cap = _vmem_cap_bytes()

    # --- Tile sizes (fit the generation-specific VMEM budget) ---
    if tm is None:
        tm = min(512, _round_up(N, _SUBLANE))
    tm = max(_SUBLANE, _round_up(min(tm, _round_up(N, _SUBLANE)), _SUBLANE))

    v_pad = _round_up(V, _LANE)
    if tv is None:
        tv = v_pad  # prefer a single V tile: table DMA'd once, widest store
        while _vmem_bytes(tm, tv, num_pos) > cap and tv > _LANE:
            tv = _round_up(max(tv // 2, _LANE), _LANE)
    tv = _round_up(min(tv, v_pad), _LANE)
    while _vmem_bytes(tm, tv, num_pos) > cap and tm > _SUBLANE:
        tm = max(_SUBLANE, _round_up(tm // 2, _SUBLANE))

    # Pad V up to a multiple of tv (never un-tile: avoids VMEM blow-up for odd V)
    v_pad = _round_up(v_pad, tv)
    if v_pad != V:
        emb_weight = jnp.pad(emb_weight, ((0, 0), (0, v_pad - V)))

    n_pad = _round_up(N, tm)
    if n_pad != N:
        idx = jnp.pad(idx, (0, n_pad - N))  # padded rows read row 0, sliced off later
    idx2d = idx.reshape(n_pad, 1)

    grid_m = n_pad // tm
    grid_v = v_pad // tv

    if grid_v > 1:
        # V axis OUTER, rows INNER: emb block index constant across inner steps,
        # so the table slab stays resident (no per-step re-DMA).
        grid = (grid_v, grid_m)
        idx_spec = pl.BlockSpec((tm, 1), lambda j, i: (i, 0))
        emb_spec = pl.BlockSpec((num_pos, tv), lambda j, i: (0, j))
        out_spec = pl.BlockSpec((tm, tv), lambda j, i: (i, j))
    else:
        # Single V tile: keep the row axis leading (>= 2 steps for v7x megacore).
        grid = (grid_m, grid_v)
        idx_spec = pl.BlockSpec((tm, 1), lambda i, j: (i, 0))
        emb_spec = pl.BlockSpec((num_pos, tv), lambda i, j: (0, j))
        out_spec = pl.BlockSpec((tm, tv), lambda i, j: (i, j))

    vmem_limit = int(min(cap, max(_vmem_bytes(tm, tv, num_pos), 16 << 20)))

    cost = pl.CostEstimate(
        flops=2 * n_pad * num_pos * v_pad,
        transcendentals=0,
        bytes_accessed=n_pad * v_pad * 4 + num_pos * v_pad * 4 + n_pad * 4,
    )

    out_flat = pl.pallas_call(
        _pos_embedding_kernel,
        out_shape=jax.ShapeDtypeStruct((n_pad, v_pad), emb_weight.dtype),
        grid_spec=pltpu.PrefetchScalarGridSpec(
            num_scalar_prefetch=0,
            grid=grid,
            in_specs=[idx_spec, emb_spec],
            out_specs=out_spec,
        ),
        compiler_params=pltpu.CompilerParams(
            dimension_semantics=("parallel", "parallel"),
            vmem_limit_bytes=vmem_limit,
        ),
        cost_estimate=cost,
    )(idx2d, emb_weight)

    return out_flat[:N, :V].reshape(B, S, V)


if __name__ == "__main__":
    # Model hyperparameters implied by PosModel.__init__
    seq_length = 16
    vocab_size = 128
    position_group_size = 2
    num_pos = seq_length // position_group_size  # embedding rows

    # Small example shapes
    B, S = 2, 8

    key = jax.random.PRNGKey(0)
    k_w, k_pos, k_tok = jax.random.split(key, 3)

    # Deterministic parameter init: normal(mean=0, std=0.02), matching
    # torch.nn.init.normal_(self.pos_model.weight, mean=0, std=0.02)
    emb_weight = 0.02 * jax.random.normal(k_w, (num_pos, vocab_size), dtype=jnp.float32)

    positions = jax.random.randint(k_pos, (B, S), 0, seq_length, dtype=jnp.int32)
    tokens = jax.random.randint(k_tok, (B, S), 0, vocab_size, dtype=jnp.int32)  # unused

    out = pos_model_forward(positions, tokens, emb_weight, position_group_size)
    out = jax.block_until_ready(out)

    # Reference check (plain JAX gather)
    ref = jnp.take(emb_weight, positions // position_group_size, axis=0)
    assert out.shape == (B, S, vocab_size)
    assert jnp.allclose(out, ref, atol=1e-6, rtol=1e-6)

    print("KERNEL_OK")
</pallas_src>

<mosaic_0001>
module attributes {stable_mosaic.version = 11 : i64} {
  func.func @_pos_embedding_kernel(%arg0: i32, %arg1: i32, %arg2: memref<16x1xi32, #tpu.memory_space<vmem>>, %arg3: memref<8x128xf32, #tpu.memory_space<vmem>>, %arg4: memref<16x128xf32, #tpu.memory_space<vmem>>) attributes {dimension_semantics = [#tpu.dimension_semantics<parallel>, #tpu.dimension_semantics<parallel>], iteration_bounds = array<i64: 1, 1>, scalar_prefetch = 0 : i64, scratch_operands = 0 : i64, tpu.core_type = #tpu.core_type<tc>, window_params = [{transform_indices = @transform_0, window_bounds = array<i64: 16, 1>}, {transform_indices = @transform_1, window_bounds = array<i64: 8, 128>}, {transform_indices = @transform_2, window_bounds = array<i64: 16, 128>}]} {
    %c0 = arith.constant 0 : index
    %c0_0 = arith.constant 0 : index
    %0 = vector.load %arg2[%c0, %c0_0] : memref<16x1xi32, #tpu.memory_space<vmem>>, vector<16x1xi32>
    %1 = tpu.iota {dimensions = array<i32: 1>} : vector<16x8xi32>
    %2 = vector.broadcast %0 : vector<16x1xi32> to vector<16x8xi32>
    %3 = arith.cmpi eq, %2, %1 : vector<16x8xi32>
    %4 = arith.extui %3 : vector<16x8xi1> to vector<16x8xi32>
    %5 = arith.sitofp %4 : vector<16x8xi32> to vector<16x8xf32>
    %c0_1 = arith.constant 0 : index
    %c0_2 = arith.constant 0 : index
    %6 = vector.load %arg3[%c0_1, %c0_2] : memref<8x128xf32, #tpu.memory_space<vmem>>, vector<8x128xf32>
    %cst = arith.constant dense<0.000000e+00> : vector<16x128xf32>
    %7 = tpu.matmul %5, %6, %cst {dimension_numbers = #tpu.dot_dimension_numbers<[1], [0], [0], [1], [0, 0, 1, 1], [], []>, precision = #tpu.contract_precision<fp32>} : vector<16x8xf32>, vector<8x128xf32>, vector<16x128xf32> -> vector<16x128xf32>
    %c0_3 = arith.constant 0 : index
    %c0_4 = arith.constant 0 : index
    %8 = vector.load %arg4[%c0_3, %c0_4] : memref<16x128xf32, #tpu.memory_space<vmem>>, vector<16x128xf32>
    tpu.vector_store %arg4[%c0_3, %c0_4], %7 {strides = array<i32>} : memref<16x128xf32, #tpu.memory_space<vmem>>, vector<16x128xf32>,
    return
  }
  func.func @transform_0(%arg0: i32, %arg1: i32) -> (i32, i32) {
    %c0_i32 = arith.constant 0 : i32
    %c0_i32_0 = arith.constant 0 : i32
    return %arg0, %c0_i32 : i32, i32
  }
  func.func @transform_1(%arg0: i32, %arg1: i32) -> (i32, i32) {
    %c0_i32 = arith.constant 0 : i32
    %c0_i32_0 = arith.constant 0 : i32
    return %c0_i32, %arg1 : i32, i32
  }
  func.func @transform_2(%arg0: i32, %arg1: i32) -> (i32, i32) {
    %c0_i32 = arith.constant 0 : i32
    return %arg0, %arg1 : i32, i32
  }
}

</mosaic_0001>

<bundles_post_ra>
// kernel: tpu_custom_call.1
= control target key start
LH: loop header
LB: loop body
LE: loop exit
PB: predicated region body
PF: predicated region fallthrough
CT: control target
= control target key end

     0   :  { %v627_v2 = vmov 0   ;;  %s667_s0 = inlined_call_operand.vmem [shape: s32[16,1], index: 0, kind: input, shape index: {}]   ;;  %s668_s1 = inlined_call_operand.vmem [shape: f32[8,128], index: 1, kind: input, shape index: {}]   ;;  %s669_s2 = inlined_call_operand.hbm [shape: f32[16,128], index: 2, kind: output, shape index: {}]  }
   0x1   :  { %v12_v0 = vld [vmem:[%s667_s0] sm:$0xff]  ;;  %604 = vset.pattern.permute.xlu0 %v627_v2 }
   0x2   :  { %v28_v1 = vld [vmem:[%s668_s1] sm:$0xff] }
   0x3   :  { %v67_v3 = vand.u32 4294901760, %v28_v1 }
   0x4   :  { %7 = vsyncpa [#allocation3], 0  ;;  %17 = vperm.xlu0 %604, %v12_v0   ;;  %v13_v4 = vld [vmem:[%s667_s0 + $0x8] sm:$0xff]  ;;  %v14_v9 = vlaneseq  ;;  %vm29_vm0 = vcmask 64512   ;;  %v628_v12 = vmov 0.0   ;;  %s629_s0 = smov [#allocation2]  }
   0x5   :  { %v154_v5 = vsub.f32 %v28_v1, %v67_v3  ;;  %569 = vmatprep.subr.mxu0 %v67_v3  ;;  %s532_s1 = sshll.u32 %s629_s0, 4  ;;  %s533_s1 = int_to_ptr.vmem [resolvable:$true] %s532_s1 }
   0x6   :  { %570 = vmatpush3.msra.mxu0 %v67_v3  ;;  %v15_v10 = vand.u32 127, %v14_v9  ;;  %s605_s15 = scalar_lea.vmem %s533_s1, 256  ;;  %p610_p1 = scmp.lt.s32.totalorder %s533_s1, %s533_s1 }
   0x7   :  { %v155_v6 = vand.u32 4294901760, %v154_v5  ;;  %579 = vmatprep.subr.mxu0 %v154_v5  ;;  %p606_p0 = scmp.ne.s32.totalorder %s533_s1, %s605_s15  ;;  %p611_p2 = scmp.lt.s32.totalorder %s605_s15, %s605_s15 }
   0x8   :  { %20 = vperm.xlu0 %604, %v13_v4  }
   0x9   :  { %v156_v7 = vsub.f32 %v154_v5, %v155_v6  ;;  %p612_p3 = por %p611_p2, %p610_p1 }
   0xb   :  { %v157_v8 = vand.u32 4294901760, %v156_v7  ;;  %p613_p4 = pnand %p612_p3, %p606_p0 }
   0xd   :  { %574 = vmatprep.subr.mxu1 %v157_v8 }
   0xe   :  { %575 = vmatpush3.msra.mxu1 %v157_v8 }
   0xf   :  { %584 = vmatprep.subr.mxu1 %v67_v3 }
  0x7f   :  { %v18_v11 = vpop.permute.xlu0 %17 }
  0x80   :  { %vm22_vm1 = vcmp.eq.s32.totalorder %v18_v11, %v15_v10 }
  0x81   :  { %v543_v13 = vsel %vm22_vm1, 1.0, %v628_v12 }
  0x82   :  { %v31_v14 = vsel %vm29_vm0, %v543_v13, 0  ;;  %576 = vmatprep.mubr.msk.f32.mxu1 %vm29_vm0, %v543_v13 }
  0x83   :  { %v103_v15 = vsub.f32 %v31_v14, %v31_v14  ;;  %v21_v16 = vpop.permute.xlu0 %20 }
  0x84   :  { %vm23_vm2 = vcmp.eq.s32.totalorder %v21_v16, %v15_v10 }
  0x85   :  { %v544_v17 = vsel %vm23_vm2, 1.0, %v628_v12  ;;  %v104_v18 = vand.u32 4294901760, %v103_v15 }
  0x86   :  { %v34_v19 = vsel %vm29_vm0, %v544_v17, 0  ;;  %577 = vmatmul.mubr.msk.f32.vlgmr.msra.gmra.mxu1 %vm29_vm0, %v544_v17 }
  0x87   :  { %v113_v20 = vsub.f32 %v34_v19, %v34_v19  ;;  %586 = vmatprep.mubr.f32.mxu1 %v104_v18  ;;  %585 = vmatpush3.msra.mxu1 %v67_v3  ;;  %v105_v21 = vsub.f32 %v103_v15, %v104_v18 }
  0x88   :  { %594 = vmatprep.subr.mxu1 %v67_v3 }
  0x89   :  { %v106_v22 = vand.u32 4294901760, %v105_v21  ;;  %v114_v23 = vand.u32 4294901760, %v113_v20 }
  0x8b   :  { %571 = vmatprep.mubr.f32.mxu0 %v106_v22  ;;  %587 = vmatmul.mubr.f32.vlgmr.msra.gmra.mxu1 %v114_v23  ;;  %v115_v24 = vsub.f32 %v113_v20, %v114_v23 }
  0x8c   :  { %596 = vmatprep.mubr.msk.f32.mxu1 %vm29_vm0, %v543_v13  ;;  %595 = vmatpush3.msra.mxu1 %v67_v3 }
  0x8d   :  { %v116_v25 = vand.u32 4294901760, %v115_v24 }
  0x8f   :  { %572 = vmatmul.mubr.f32.vlgmr.msra.gmra.mxu0 %v116_v25  ;;  %597 = vmatmul.mubr.msk.f32.vlgmr.msra.gmra.mxu1 %vm29_vm0, %v544_v17 }
  0x90   :  { %580 = vmatpush3.msra.mxu0 %v154_v5  ;;  %581 = vmatprep.mubr.f32.mxu0 %v103_v15 }
  0x91   :  { %589 = vmatprep.subr.mxu0 %v155_v6 }
  0x93   :  { %582 = vmatmul.mubr.f32.vlgmr.msra.gmra.mxu0 %v113_v20 }
  0x94   :  { %590 = vmatpush3.msra.mxu0 %v155_v6  ;;  %591 = vmatprep.mubr.msk.f32.mxu0 %vm29_vm0, %v543_v13 }
  0x97   :  { %592 = vmatmul.mubr.msk.f32.vlgmr.msra.gmra.mxu0 %vm29_vm0, %v544_v17 }
 0x146   :  { %v578_v26 = vpop.f32.mrf.mxu1 }
 0x148   :  { %v194_v27 = vpop.f32.mrf.mxu1 }
 0x14b   :  { %v588_v28 = vpop.f32.mrf.mxu1 }
 0x14d   :  { %v355_v32 = vpop.f32.mrf.mxu1 }
 0x14f   :  { %v573_v29 = vpop.f32.mrf.mxu0  ;;  %v598_v39 = vpop.f32.mrf.mxu1 }
 0x150   :  { %v201_v31 = vadd.f32 %v578_v26, %v573_v29 }
 0x151   :  { %v108_v30 = vpop.f32.mrf.mxu0  ;;  %v515_v46 = vpop.f32.mrf.mxu1 }
 0x152   :  { %v195_v34 = vadd.f32 %v194_v27, %v108_v30 }
 0x153   :  { %v583_v33 = vpop.f32.mrf.mxu0 }
 0x154   :  { %v282_v35 = vadd.f32 %v583_v33, %v201_v31 }
 0x155   :  { %v274_v36 = vpop.f32.mrf.mxu0 }
 0x156   :  { %v275_v37 = vadd.f32 %v274_v36, %v195_v34  ;;  %v364_v38 = vadd.f32 %v588_v28, %v282_v35 }
 0x157   :  { %v593_v40 = vpop.f32.mrf.mxu0 }
 0x158   :  { %v444_v41 = vadd.f32 %v593_v40, %v364_v38  ;;  %v356_v42 = vadd.f32 %v355_v32, %v275_v37 }
 0x159   :  { %v437_v43 = vpop.f32.mrf.mxu0 }
 0x15a   :  { %v522_v44 = vadd.f32 %v598_v39, %v444_v41  ;;  %v438_v45 = vadd.f32 %v437_v43, %v356_v42 }
 0x15c   :  { %526 = vst [vmem:[#allocation2 + $0x8] sm:$0xff] %v522_v44  ;;  %v516_v47 = vadd.f32 %v515_v46, %v438_v45 }
 0x15e   :  { %525 = vst [vmem:[#allocation2] sm:$0xff] %v516_v47 }
 0x15f   :  { %616 = shalt.err (!%p613_p4)
}
 0x160   :  { %s630_s16 = smov 128   ;;  %s631_s17 = smov 8  }
 0x161   :  { %538 = dma.vmem_to_hbm [thread:$0]  %s533_s1, 256, %s669_s2, [#allocation3], %s630_s16, %s630_s16, %s631_s17  }
 0x162   :  { %625 = dma.done.wait [#allocation3], 256  }
 0x163   :  { %626 = vsyncadd [#allocation3], 4294967040 }
 0x164   :  { %542 = vsyncpa [#allocation3], 1 }

</bundles_post_ra>
